<compile_context>
chip_gen: v5e
topology: v5e:2x2
jax: 0.10.0
libtpu: 0.0.40
codegen_flags: <defaults>
</compile_context>

<pallas_src>
import numpy as np
import jax
import jax.numpy as jnp
from jax.experimental import pallas as pl
from jax.experimental.pallas import tpu as pltpu

D_IN = 20      # fc1 input features
HID = 256      # fc1 output / fc2 input features
N_OUT = 2      # fc2 output features
TILE_N = 1024  # batch columns (lanes) per grid step (multiple of 128)


def mlp_bank_kernel(xt_ref, w1_ref, b1_ref, w2_ref, b2_ref, ot_ref):
    # fc1 (transposed): h^T = W1 @ x^T + b1   -> (HID, tile_n)
    h = jnp.dot(w1_ref[...], xt_ref[...],
                preferred_element_type=jnp.float32) + b1_ref[...]
    # elementwise activation: x*x + x  (VPU, f32)
    a = h * h + h
    # fc2 (transposed): y^T = W2 @ a^T + b2   -> (N_OUT, tile_n)
    ot_ref[...] = jnp.dot(w2_ref[...], a.astype(w2_ref.dtype),
                          preferred_element_type=jnp.float32) + b2_ref[...]


def prepare_params(w1, b1, w2, b2, use_bf16=False):
    """One-time param prep.

    PyTorch Linear weights are already (out, in), which is exactly the layout
    the transposed formulation needs (no transpose, no padding).  Biases are
    reshaped to (out, 1) so they broadcast over the lane (batch) axis.
      w1: (256, 20), b1: (256,), w2: (2, 256), b2: (2,)
    """
    wdt = jnp.bfloat16 if use_bf16 else jnp.float32
    w1p = w1.astype(wdt)                      # (256, 20)
    w2p = w2.astype(wdt)                      # (2, 256)
    b1p = b1.astype(jnp.float32)[:, None]     # (256, 1)
    b2p = b2.astype(jnp.float32)[:, None]     # (2, 1)
    return w1p, b1p, w2p, b2p


def mlp_bank(x, prepped, tile_n=TILE_N, use_bf16=False):
    """x: (N, 20) float32 -> (N, 2) float32."""
    w1p, b1p, w2p, b2p = prepped
    in_dt = jnp.bfloat16 if use_bf16 else jnp.float32
    n = x.shape[0]

    # Lane-pad the batch to a multiple of 128; cap the tile for tiny batches.
    n_min = max(128, pl.cdiv(n, 128) * 128)
    tn = min(tile_n, n_min)
    n_tiles = pl.cdiv(n, tn)
    n_pad = n_tiles * tn

    # Single transpose + zero-pad: (N, 20) -> (20, n_pad); batch -> lanes.
    xt = jnp.zeros((D_IN, n_pad), in_dt).at[:, :n].set(x.T.astype(in_dt))

    out_t = pl.pallas_call(
        mlp_bank_kernel,
        out_shape=jax.ShapeDtypeStruct((N_OUT, n_pad), jnp.float32),
        grid_spec=pltpu.PrefetchScalarGridSpec(
            num_scalar_prefetch=0,
            grid=(n_tiles,),
            in_specs=[
                pl.BlockSpec((D_IN, tn), lambda i: (0, i)),    # x^T tile
                pl.BlockSpec((HID, D_IN), lambda i: (0, 0)),   # W1 (resident)
                pl.BlockSpec((HID, 1), lambda i: (0, 0)),      # b1 (resident)
                pl.BlockSpec((N_OUT, HID), lambda i: (0, 0)),  # W2 (resident)
                pl.BlockSpec((N_OUT, 1), lambda i: (0, 0)),    # b2 (resident)
            ],
            out_specs=pl.BlockSpec((N_OUT, tn), lambda i: (0, i)),
        ),
        compiler_params=pltpu.CompilerParams(
            dimension_semantics=("parallel",)),
    )(xt, w1p, b1p, w2p, b2p)

    # Drop padded batch columns, back to row-major (N, 2).
    return out_t[:, :n].T


def reference(x, params):
    """Pure-JAX reference reproducing the PyTorch forward exactly."""
    w1, b1, w2, b2 = params
    h = x @ w1.T + b1
    a = h * h + h
    return a @ w2.T + b2


def init_params(key):
    ks = jax.random.split(key, 4)

    def u(k, shape, fan_in):
        bound = 1.0 / np.sqrt(fan_in)
        return jax.random.uniform(k, shape, jnp.float32, -bound, bound)

    w1 = u(ks[0], (HID, D_IN), D_IN)     # fc1.weight (out, in)
    b1 = u(ks[1], (HID,), D_IN)          # fc1.bias
    w2 = u(ks[2], (N_OUT, HID), HID)     # fc2.weight
    b2 = u(ks[3], (N_OUT,), HID)         # fc2.bias
    return (w1, b1, w2, b2)


if __name__ == "__main__":
    key = jax.random.PRNGKey(0)
    kx, kp = jax.random.split(key)
    x = jax.random.normal(kx, (2, D_IN), jnp.float32)   # batch=2, 20 features
    params = init_params(kp)

    prepped = prepare_params(*params)                   # one-time param prep
    out = mlp_bank(x, prepped)                          # f32 path (exact match)
    out = jax.block_until_ready(out)
    assert out.shape == (2, N_OUT)

    ref = reference(x, params)
    np.testing.assert_allclose(np.asarray(out), np.asarray(ref),
                               rtol=1e-4, atol=1e-4)
    print("KERNEL_OK")
</pallas_src>

<mosaic_0001>
module attributes {stable_mosaic.version = 11 : i64} {
  func.func @mlp_bank_kernel(%arg0: i32, %arg1: memref<20x128xf32, #tpu.memory_space<vmem>>, %arg2: memref<256x20xf32, #tpu.memory_space<vmem>>, %arg3: memref<256x1xf32, #tpu.memory_space<vmem>>, %arg4: memref<2x256xf32, #tpu.memory_space<vmem>>, %arg5: memref<2x1xf32, #tpu.memory_space<vmem>>, %arg6: memref<2x128xf32, #tpu.memory_space<vmem>>) attributes {dimension_semantics = [#tpu.dimension_semantics<parallel>], iteration_bounds = array<i64: 1>, scalar_prefetch = 0 : i64, scratch_operands = 0 : i64, tpu.core_type = #tpu.core_type<tc>, window_params = [{transform_indices = @transform_0, window_bounds = array<i64: 20, 128>}, {pipeline_mode = #tpu.pipeline_mode<synchronous>, transform_indices = @transform_1, window_bounds = array<i64: 256, 20>}, {pipeline_mode = #tpu.pipeline_mode<synchronous>, transform_indices = @transform_2, window_bounds = array<i64: 256, 1>}, {pipeline_mode = #tpu.pipeline_mode<synchronous>, transform_indices = @transform_3, window_bounds = array<i64: 2, 256>}, {pipeline_mode = #tpu.pipeline_mode<synchronous>, transform_indices = @transform_4, window_bounds = array<i64: 2, 1>}, {transform_indices = @transform_5, window_bounds = array<i64: 2, 128>}]} {
    %c0 = arith.constant 0 : index
    %c0_0 = arith.constant 0 : index
    %0 = vector.load %arg2[%c0, %c0_0] : memref<256x20xf32, #tpu.memory_space<vmem>>, vector<256x20xf32>
    %c0_1 = arith.constant 0 : index
    %c0_2 = arith.constant 0 : index
    %1 = vector.load %arg1[%c0_1, %c0_2] : memref<20x128xf32, #tpu.memory_space<vmem>>, vector<20x128xf32>
    %cst = arith.constant dense<0.000000e+00> : vector<256x128xf32>
    %2 = tpu.matmul %0, %1, %cst {dimension_numbers = #tpu.dot_dimension_numbers<[1], [0], [0], [1], [0, 0, 1, 1], [], []>} : vector<256x20xf32>, vector<20x128xf32>, vector<256x128xf32> -> vector<256x128xf32>
    %c0_3 = arith.constant 0 : index
    %c0_4 = arith.constant 0 : index
    %3 = vector.load %arg3[%c0_3, %c0_4] : memref<256x1xf32, #tpu.memory_space<vmem>>, vector<256x1xf32>
    %4 = vector.broadcast %3 : vector<256x1xf32> to vector<256x128xf32>
    %5 = arith.addf %2, %4 : vector<256x128xf32>
    %6 = arith.mulf %5, %5 : vector<256x128xf32>
    %7 = arith.addf %6, %5 : vector<256x128xf32>
    %c0_5 = arith.constant 0 : index
    %c0_6 = arith.constant 0 : index
    %8 = vector.load %arg4[%c0_5, %c0_6] : memref<2x256xf32, #tpu.memory_space<vmem>>, vector<2x256xf32>
    %cst_7 = arith.constant dense<0.000000e+00> : vector<2x128xf32>
    %9 = tpu.matmul %8, %7, %cst_7 {dimension_numbers = #tpu.dot_dimension_numbers<[1], [0], [0], [1], [0, 0, 1, 1], [], []>} : vector<2x256xf32>, vector<256x128xf32>, vector<2x128xf32> -> vector<2x128xf32>
    %c0_8 = arith.constant 0 : index
    %c0_9 = arith.constant 0 : index
    %10 = vector.load %arg5[%c0_8, %c0_9] : memref<2x1xf32, #tpu.memory_space<vmem>>, vector<2x1xf32>
    %11 = vector.broadcast %10 : vector<2x1xf32> to vector<2x128xf32>
    %12 = arith.addf %9, %11 : vector<2x128xf32>
    %c0_10 = arith.constant 0 : index
    %c0_11 = arith.constant 0 : index
    %13 = vector.load %arg6[%c0_10, %c0_11] : memref<2x128xf32, #tpu.memory_space<vmem>>, vector<2x128xf32>
    tpu.vector_store %arg6[%c0_10, %c0_11], %12 {strides = array<i32>} : memref<2x128xf32, #tpu.memory_space<vmem>>, vector<2x128xf32>,
    return
  }
  func.func @transform_0(%arg0: i32) -> (i32, i32) {
    %c0_i32 = arith.constant 0 : i32
    %c0_i32_0 = arith.constant 0 : i32
    return %c0_i32, %arg0 : i32, i32
  }
  func.func @transform_1(%arg0: i32) -> (i32, i32) {
    %c0_i32 = arith.constant 0 : i32
    %c0_i32_0 = arith.constant 0 : i32
    %c0_i32_1 = arith.constant 0 : i32
    return %c0_i32, %c0_i32_0 : i32, i32
  }
  func.func @transform_2(%arg0: i32) -> (i32, i32) {
    %c0_i32 = arith.constant 0 : i32
    %c0_i32_0 = arith.constant 0 : i32
    %c0_i32_1 = arith.constant 0 : i32
    return %c0_i32, %c0_i32_0 : i32, i32
  }
  func.func @transform_3(%arg0: i32) -> (i32, i32) {
    %c0_i32 = arith.constant 0 : i32
    %c0_i32_0 = arith.constant 0 : i32
    %c0_i32_1 = arith.constant 0 : i32
    return %c0_i32, %c0_i32_0 : i32, i32
  }
  func.func @transform_4(%arg0: i32) -> (i32, i32) {
    %c0_i32 = arith.constant 0 : i32
    %c0_i32_0 = arith.constant 0 : i32
    %c0_i32_1 = arith.constant 0 : i32
    return %c0_i32, %c0_i32_0 : i32, i32
  }
  func.func @transform_5(%arg0: i32) -> (i32, i32) {
    %c0_i32 = arith.constant 0 : i32
    %c0_i32_0 = arith.constant 0 : i32
    return %c0_i32, %arg0 : i32, i32
  }
}

</mosaic_0001>

<bundles_post_ra>
// kernel: tpu_custom_call.1
= control target key start
LH: loop header
LB: loop body
LE: loop exit
PB: predicated region body
PF: predicated region fallthrough
CT: control target
= control target key end

     0   :  { %vm345_vm0 = vcmask 1043456   ;;  %v669_v2 = vmov 0   ;;  %vm248_vm1 = vcmask 162816   ;;  %s1034_s0 = inlined_call_operand.vmem [shape: f32[20,128], index: 0, kind: input, shape index: {}]   ;;  %s1035_s1 = inlined_call_operand.vmem [shape: f32[256,20], index: 1, kind: input, shape index: {}]   ;;  %s1036_s2 = inlined_call_operand.vmem [shape: f32[256,1], index: 2, kind: input, shape index: {}]   ;;  %s1037_s3 = inlined_call_operand.vmem [shape: f32[2,256], index: 3, kind: input, shape index: {}]   ;;  %s1038_s4 = inlined_call_operand.vmem [shape: f32[2,1], index: 4, kind: input, shape index: {}]   ;;  %s1039_s5 = inlined_call_operand.hbm [shape: f32[2,128], index: 5, kind: output, shape index: {}]  }
   0x1   :  { %v55_v0 = vld [vmem:[%s1034_s0 + $0x10] sm:$0xf]  ;;  %v87_v1 = vld [vmem:[%s1036_s2 + $0xf8] sm:$0xff]  ;;  %641 = vset.pattern.permute.xlu1 %v669_v2  ;;  %640 = vset.pattern.permute.xlu0 %v669_v2  ;;  %v54_v4 = vld [vmem:[%s1034_s0 + $0x8] sm:$0xff] }
   0x2   :  { %v71_v3 = vld [vmem:[%s1036_s2 + $0x78] sm:$0xff]  ;;  %596 = vmatpush.msk.msra.mxu0 %vm345_vm0, %v55_v0  ;;  %630 = vmatpush.msk.msra.mxu2 %vm345_vm0, %v55_v0  ;;  %v53_v5 = vld [vmem:[%s1034_s0] sm:$0xff]  ;;  %v43_v8 = vld [vmem:[%s1035_s1 + $0xb0] sm:$0xff] }
   0x3   :  { %631 = vmatpush.msk.msra.mxu3 %vm345_vm0, %v55_v0  ;;  %245 = vperm.xlu0 %640, %v87_v1   ;;  %v21_v6 = vld [vmem:[%s1035_s1] sm:$0xff]  ;;  %v36_v7 = vld [vmem:[%s1035_s1 + $0x78] sm:$0xff]  ;;  %v70_v9 = vld [vmem:[%s1036_s2 + $0x70] sm:$0xff] }
   0x4   :  { %165 = vperm.xlu1 %641, %v71_v3   ;;  %363 = vmatpush.msra.mxu0 %v54_v4  ;;  %v86_v10 = vld [vmem:[%s1036_s2 + $0xf0] sm:$0xff]  ;;  %v85_v11 = vld [vmem:[%s1036_s2 + $0xe8] sm:$0xff]  ;;  %v32_v12 = vld [vmem:[%s1035_s1 + $0x58] sm:$0xff] }
   0x5   :  { %633 = vmatpush.msra.mxu2 %v54_v4  ;;  %634 = vmatpush.msra.mxu3 %v54_v4  ;;  %v22_v13 = vld [vmem:[%s1035_s1 + $0x8] sm:$0xff]  ;;  %v37_v14 = vld [vmem:[%s1035_s1 + $0x80] sm:$0xff] }
   0x6   :  { %364 = vmatpush.msra.mxu0 %v53_v5  ;;  %642 = vset.pattern.permute.xlu2 %v669_v2 }
   0x7   :  { %636 = vmatpush.msra.mxu2 %v53_v5  ;;  %637 = vmatpush.msra.mxu3 %v53_v5 }
   0x8   :  { %597 = vmatmul.msk.f32.vlgmr.msra.gmra.mxu0 %vm248_vm1, %v21_v6  ;;  %612 = vmatmul.msk.f32.vlgmr.msra.gmra.mxu2 %vm248_vm1, %v36_v7 }
   0x9   :  { %619 = vmatmul.msk.f32.vlgmr.msra.gmra.mxu3 %vm248_vm1, %v43_v8  ;;  %160 = vperm.xlu2 %642, %v70_v9  }
   0xa   :  { %629 = vmatpush.msk.msra.mxu1 %vm345_vm0, %v55_v0 }
   0xb   :  { %240 = vperm.xlu0 %640, %v86_v10  }
   0xc   :  { %235 = vperm.xlu1 %641, %v85_v11   ;;  %632 = vmatpush.msra.mxu1 %v54_v4 }
   0xd   :  { %10 = vsyncpa [#allocation3], 0  ;;  %v44_v15 = vld [vmem:[%s1035_s1 + $0xb8] sm:$0xff]  ;;  %v84_v16 = vld [vmem:[%s1036_s2 + $0xe0] sm:$0xff]  ;;  %s587_s26 = sshll.u32 %s1039_s5, 4  ;;  %s588_s26 = int_to_ptr.hbm [resolvable:$true] %s587_s26 }
   0xe   :  { %635 = vmatpush.msra.mxu1 %v53_v5  ;;  %v69_v17 = vld [vmem:[%s1036_s2 + $0x68] sm:$0xff]  ;;  %v83_v18 = vld [vmem:[%s1036_s2 + $0xd8] sm:$0xff]  ;;  %v33_v19 = vld [vmem:[%s1035_s1 + $0x60] sm:$0xff] }
   0xf   :  { %608 = vmatmul.msk.f32.vlgmr.msra.gmra.mxu1 %vm248_vm1, %v32_v12  ;;  %v23_v20 = vld [vmem:[%s1035_s1 + $0x10] sm:$0xff]  ;;  %v38_v21 = vld [vmem:[%s1035_s1 + $0x88] sm:$0xff]  ;;  %v45_v22 = vld [vmem:[%s1035_s1 + $0xc0] sm:$0xff] }
  0x10   :  { %598 = vmatmul.msk.f32.gmra.mxu0 %vm248_vm1, %v22_v13  ;;  %613 = vmatmul.msk.f32.gmra.mxu2 %vm248_vm1, %v37_v14  ;;  %v68_v23 = vld [vmem:[%s1036_s2 + $0x60] sm:$0xff]  ;;  %v82_v24 = vld [vmem:[%s1036_s2 + $0xd0] sm:$0xff]  ;;  %v67_v25 = vld [vmem:[%s1036_s2 + $0x58] sm:$0xff] }
  0x11   :  { %620 = vmatmul.msk.f32.gmra.mxu3 %vm248_vm1, %v44_v15  ;;  %230 = vperm.xlu2 %642, %v84_v16   ;;  %v34_v26 = vld [vmem:[%s1035_s1 + $0x68] sm:$0xff]  ;;  %v24_v27 = vld [vmem:[%s1035_s1 + $0x18] sm:$0xff]  ;;  %v39_v28 = vld [vmem:[%s1035_s1 + $0x90] sm:$0xff] }
  0x12   :  { %v46_v29 = vld [vmem:[%s1035_s1 + $0xc8] sm:$0xff]  ;;  %v66_v31 = vld [vmem:[%s1036_s2 + $0x50] sm:$0xff]  ;;  %v80_v32 = vld [vmem:[%s1036_s2 + $0xc0] sm:$0xff] }
  0x13   :  { %155 = vperm.xlu0 %640, %v69_v17   ;;  %v81_v30 = vld [vmem:[%s1036_s2 + $0xc8] sm:$0xff]  ;;  %v35_v33 = vld [vmem:[%s1035_s1 + $0x70] sm:$0xff]  ;;  %v25_v34 = vld [vmem:[%s1035_s1 + $0x20] sm:$0xff] }
  0x14   :  { %225 = vperm.xlu1 %641, %v83_v18   ;;  %v40_v35 = vld [vmem:[%s1035_s1 + $0x98] sm:$0xff]  ;;  %v47_v36 = vld [vmem:[%s1035_s1 + $0xd0] sm:$0xff]  ;;  %v65_v37 = vld [vmem:[%s1036_s2 + $0x48] sm:$0xff] }
  0x15   :  { %v79_v38 = vld [vmem:[%s1036_s2 + $0xb8] sm:$0xff]  ;;  %v64_v39 = vld [vmem:[%s1036_s2 + $0x40] sm:$0xff]  ;;  %v26_v40 = vld [vmem:[%s1035_s1 + $0x28] sm:$0xff] }
  0x16   :  { %v41_v41 = vld [vmem:[%s1035_s1 + $0xa0] sm:$0xff]  ;;  %v48_v42 = vld [vmem:[%s1035_s1 + $0xd8] sm:$0xff]  ;;  %v78_v43 = vld [vmem:[%s1036_s2 + $0xb0] sm:$0xff] }
  0x17   :  { %609 = vmatmul.msk.f32.gmra.mxu1 %vm248_vm1, %v33_v19  ;;  %v63_v44 = vld [vmem:[%s1036_s2 + $0x38] sm:$0xff]  ;;  %v77_v45 = vld [vmem:[%s1036_s2 + $0xa8] sm:$0xff]  ;;  %v27_v46 = vld [vmem:[%s1035_s1 + $0x30] sm:$0xff] }
  0x18   :  { %599 = vmatmul.msk.f32.gmra.mxu0 %vm248_vm1, %v23_v20  ;;  %614 = vmatmul.msk.f32.gmra.mxu2 %vm248_vm1, %v38_v21  ;;  %v42_v47 = vld [vmem:[%s1035_s1 + $0xa8] sm:$0xff]  ;;  %v49_v48 = vld [vmem:[%s1035_s1 + $0xe0] sm:$0xff]  ;;  %v62_v49 = vld [vmem:[%s1036_s2 + $0x30] sm:$0xff] }
  0x19   :  { %621 = vmatmul.msk.f32.gmra.mxu3 %vm248_vm1, %v45_v22  ;;  %150 = vperm.xlu2 %642, %v68_v23   ;;  %v76_v50 = vld [vmem:[%s1036_s2 + $0xa0] sm:$0xff]  ;;  %v61_v51 = vld [vmem:[%s1036_s2 + $0x28] sm:$0xff]  ;;  %v28_v52 = vld [vmem:[%s1035_s1 + $0x38] sm:$0xff] }
  0x1a   :  { %v50_v53 = vld [vmem:[%s1035_s1 + $0xe8] sm:$0xff]  ;;  %v75_v54 = vld [vmem:[%s1036_s2 + $0x98] sm:$0xff]  ;;  %v60_v55 = vld [vmem:[%s1036_s2 + $0x20] sm:$0xff] }
  0x1b   :  { %220 = vperm.xlu0 %640, %v82_v24   ;;  %v74_v56 = vld [vmem:[%s1036_s2 + $0x90] sm:$0xff]  ;;  %v29_v57 = vld [vmem:[%s1035_s1 + $0x40] sm:$0xff]  ;;  %v59_v59 = vld [vmem:[%s1036_s2 + $0x18] sm:$0xff] }
  0x1c   :  { %145 = vperm.xlu1 %641, %v67_v25   ;;  %v51_v58 = vld [vmem:[%s1035_s1 + $0xf0] sm:$0xff]  ;;  %v73_v60 = vld [vmem:[%s1036_s2 + $0x88] sm:$0xff]  ;;  %v52_v63 = vld [vmem:[%s1035_s1 + $0xf8] sm:$0xff] }
  0x1d   :  { %v58_v61 = vld [vmem:[%s1036_s2 + $0x10] sm:$0xff]  ;;  %v30_v62 = vld [vmem:[%s1035_s1 + $0x48] sm:$0xff]  ;;  %v72_v0 = vld [vmem:[%s1036_s2 + $0x80] sm:$0xff] }
  0x1e   :  { %v57_v1 = vld [vmem:[%s1036_s2 + $0x8] sm:$0xff]  ;;  %v56_v2 = vld [vmem:[%s1036_s2] sm:$0xff]  ;;  %v31_v3 = vld [vmem:[%s1035_s1 + $0x50] sm:$0xff] }
  0x1f   :  { %610 = vmatmul.msk.f32.gmra.mxu1 %vm248_vm1, %v34_v26  ;;  %v527_v4 = vld [vmem:[%s1038_s4] sm:$0x3] }
  0x20   :  { %600 = vmatmul.msk.f32.gmra.mxu0 %vm248_vm1, %v24_v27  ;;  %615 = vmatmul.msk.f32.gmra.mxu2 %vm248_vm1, %v39_v28 }
  0x21   :  { %622 = vmatmul.msk.f32.gmra.mxu3 %vm248_vm1, %v46_v29  ;;  %215 = vperm.xlu2 %642, %v81_v30  }
  0x23   :  { %140 = vperm.xlu0 %640, %v66_v31  }
  0x24   :  { %210 = vperm.xlu1 %641, %v80_v32  }
  0x27   :  { %611 = vmatmul.msk.f32.gmra.mxu1 %vm248_vm1, %v35_v33 }
  0x28   :  { %601 = vmatmul.msk.f32.gmra.mxu0 %vm248_vm1, %v25_v34  ;;  %616 = vmatmul.msk.f32.gmra.mxu2 %vm248_vm1, %v40_v35 }
  0x29   :  { %623 = vmatmul.msk.f32.gmra.mxu3 %vm248_vm1, %v47_v36  ;;  %135 = vperm.xlu2 %642, %v65_v37  }
  0x2b   :  { %205 = vperm.xlu0 %640, %v79_v38  }
  0x2c   :  { %130 = vperm.xlu1 %641, %v64_v39  }
  0x30   :  { %602 = vmatmul.msk.f32.gmra.mxu0 %vm248_vm1, %v26_v40  ;;  %617 = vmatmul.msk.f32.gmra.mxu2 %vm248_vm1, %v41_v41 }
  0x31   :  { %624 = vmatmul.msk.f32.gmra.mxu3 %vm248_vm1, %v48_v42  ;;  %200 = vperm.xlu2 %642, %v78_v43  }
  0x33   :  { %125 = vperm.xlu0 %640, %v63_v44  }
  0x34   :  { %195 = vperm.xlu1 %641, %v77_v45  }
  0x38   :  { %603 = vmatmul.msk.f32.gmra.mxu0 %vm248_vm1, %v27_v46  ;;  %618 = vmatmul.msk.f32.gmra.mxu2 %vm248_vm1, %v42_v47 }
  0x39   :  { %625 = vmatmul.msk.f32.gmra.mxu3 %vm248_vm1, %v49_v48  ;;  %120 = vperm.xlu2 %642, %v62_v49  }
  0x3b   :  { %190 = vperm.xlu0 %640, %v76_v50  }
  0x3c   :  { %115 = vperm.xlu1 %641, %v61_v51  }
  0x40   :  { %604 = vmatmul.msk.f32.gmra.mxu0 %vm248_vm1, %v28_v52 }
  0x41   :  { %626 = vmatmul.msk.f32.gmra.mxu3 %vm248_vm1, %v50_v53  ;;  %185 = vperm.xlu2 %642, %v75_v54  }
  0x43   :  { %110 = vperm.xlu0 %640, %v60_v55  }
  0x44   :  { %180 = vperm.xlu1 %641, %v74_v56  }
  0x48   :  { %605 = vmatmul.msk.f32.gmra.mxu0 %vm248_vm1, %v29_v57 }
  0x49   :  { %627 = vmatmul.msk.f32.gmra.mxu3 %vm248_vm1, %v51_v58  ;;  %105 = vperm.xlu2 %642, %v59_v59  }
  0x4b   :  { %175 = vperm.xlu0 %640, %v73_v60  }
  0x4c   :  { %100 = vperm.xlu1 %641, %v58_v61  }
  0x50   :  { %606 = vmatmul.msk.f32.gmra.mxu0 %vm248_vm1, %v30_v62 }
  0x51   :  { %628 = vmatmul.msk.f32.gmra.mxu3 %vm248_vm1, %v52_v63  ;;  %170 = vperm.xlu2 %642, %v72_v0  }
  0x53   :  { %95 = vperm.xlu0 %640, %v57_v1  }
  0x54   :  { %90 = vperm.xlu1 %641, %v56_v2  }
  0x58   :  { %607 = vmatmul.msk.f32.gmra.mxu0 %vm248_vm1, %v31_v3 }
  0x59   :  { %530 = vperm.xlu2 %642, %v527_v4  }
  0x63   :  { %v161_v15 = vpop.permute.xlu2 %160 }
  0x6b   :  { %v959_v23 = vpop.permute.xlu2 %230 }
  0x73   :  { %v151_v30 = vpop.permute.xlu2 %150 }
  0x75   :  { %v941_v5 = vpop.permute.xlu0 %245 }
  0x76   :  { %v166_v6 = vpop.permute.xlu1 %165 }
  0x7b   :  { %v973_v47 = vpop.permute.xlu2 %215 }
  0x7d   :  { %v945_v8 = vpop.permute.xlu0 %240 }
  0x7e   :  { %v947_v9 = vpop.permute.xlu1 %235 }
  0x83   :  { %v136_v55 = vpop.permute.xlu2 %135 }
  0x85   :  { %v943_v7 = vpop.f32.mrf.mxu0  ;;  %v156_v18 = vpop.permute.xlu0 %155 }
  0x86   :  { %v953_v19 = vpop.permute.xlu1 %225 }
  0x8b   :  { %v411_v10 = vpop.f32.mrf.mxu2  ;;  %v983_v61 = vpop.permute.xlu2 %200 }
  0x8c   :  { %v412_v11 = vadd.f32 %v411_v10, %v166_v6  ;;  %v949_v12 = vpop.f32.mrf.mxu3  ;;  %v399_v13 = vpop.f32.mrf.mxu1 }
  0x8d   :  { %v951_v14 = vpop.f32.mrf.mxu0  ;;  %v961_v24 = vpop.permute.xlu0 %220 }
  0x8e   :  { %v477_v16 = vmul.f32 %v412_v11, %v412_v11  ;;  %v146_v27 = vpop.permute.xlu1 %145 }
  0x8f   :  { %v400_v35 = vadd.f32 %v399_v13, %v146_v27 }
  0x90   :  { %v509_v17 = vadd.f32 %v477_v16, %v412_v11 }
  0x91   :  { %v473_v42 = vmul.f32 %v400_v35, %v400_v35 }
  0x92   :  { %539 = vmatpush.msrb.mxu1 %v509_v17 }
  0x93   :  { %v505_v49 = vadd.f32 %v473_v42, %v400_v35  ;;  %v977_v51 = vpop.f32.mrf.mxu2  ;;  %v121_v3 = vpop.permute.xlu2 %120 }
  0x94   :  { %v955_v20 = vpop.f32.mrf.mxu3  ;;  %v402_v21 = vpop.f32.mrf.mxu1 }
  0x95   :  { %v957_v22 = vpop.f32.mrf.mxu0  ;;  %v403_v31 = vadd.f32 %v402_v21, %v151_v30  ;;  %v141_v34 = vpop.permute.xlu0 %140 }
  0x96   :  { %v971_v39 = vpop.permute.xlu1 %210 }
  0x97   :  { %v474_v40 = vmul.f32 %v403_v31, %v403_v31 }
  0x99   :  { %v506_v45 = vadd.f32 %v474_v40, %v403_v31 }
  0x9b   :  { %v979_v57 = vpop.f32.mrf.mxu2  ;;  %v997_v21 = vpop.permute.xlu2 %185 }
  0x9c   :  { %v963_v25 = vpop.f32.mrf.mxu3  ;;  %v405_v26 = vpop.f32.mrf.mxu1 }
  0x9d   :  { %v965_v28 = vpop.f32.mrf.mxu0  ;;  %v406_v29 = vadd.f32 %v405_v26, %v156_v18  ;;  %v975_v50 = vpop.permute.xlu0 %205 }
  0x9e   :  { %v131_v52 = vpop.permute.xlu1 %130 }
  0x9f   :  { %v475_v37 = vmul.f32 %v406_v29, %v406_v29 }
  0xa1   :  { %v507_v44 = vadd.f32 %v475_v37, %v406_v29 }
  0xa3   :  { %v987_v63 = vpop.f32.mrf.mxu2 }
  0xa4   :  { %v967_v32 = vpop.f32.mrf.mxu3  ;;  %v408_v33 = vpop.f32.mrf.mxu1 }
  0xa5   :  { %v969_v36 = vpop.f32.mrf.mxu0  ;;  %v409_v38 = vadd.f32 %v408_v33, %v161_v15  ;;  %v126_v56 = vpop.permute.xlu0 %125  ;;  %v526_v15 = vld [vmem:[%s1037_s3] sm:$0xf]  ;;  %s670_s3 = smov [#allocation2]  }
  0xa6   :  { %v981_v58 = vpop.permute.xlu1 %195  ;;  %534 = vst [vmem:[#allocation1] ss:$4 sm:$0xff] %v526_v15  ;;  %s585_s4 = sshll.u32 %s670_s3, 4  ;;  %s586_s4 = int_to_ptr.vmem [resolvable:$true] %s585_s4 }
  0xa7   :  { %v476_v41 = vmul.f32 %v409_v38, %v409_v38 }
  0xa9   :  { %v508_v43 = vadd.f32 %v476_v41, %v409_v38 }
  0xab   :  { %540 = vmatpush.msrb.mxu1 %v508_v43  ;;  %v989_v11 = vpop.f32.mrf.mxu2 }
  0xac   :  { %v444_v46 = vpop.f32.mrf.mxu3 }
  0xad   :  { %v381_v48 = vpop.f32.mrf.mxu0  ;;  %541 = vmatpush.msrb.mxu1 %v507_v44  ;;  %v985_v62 = vpop.permute.xlu0 %190 }
  0xae   :  { %v116_v1 = vpop.permute.xlu1 %115 }
  0xaf   :  { %542 = vmatpush.msrb.mxu1 %v506_v45 }
  0xb1   :  { %543 = vmatpush.msrb.mxu1 %v505_v49 }
  0xb3   :  { %v1004_v40 = vpop.f32.mrf.mxu2 }
  0xb4   :  { %v447_v53 = vpop.f32.mrf.mxu3 }
  0xb5   :  { %v384_v54 = vpop.f32.mrf.mxu0  ;;  %v111_v6 = vpop.permute.xlu0 %110  ;;  %v448_v43 = vadd.f32 %v447_v53, %v953_v19 }
  0xb6   :  { %v991_v13 = vpop.permute.xlu1 %180 }
  0xbc   :  { %v450_v59 = vpop.f32.mrf.mxu3 }
  0xbd   :  { %v387_v60 = vpop.f32.mrf.mxu0  ;;  %v451_v33 = vadd.f32 %v450_v59, %v959_v23  ;;  %v1002_v35 = vpop.permute.xlu0 %175  ;;  %v382_v59 = vadd.f32 %v381_v48, %v116_v1 }
  0xbe   :  { %v101_v44 = vpop.permute.xlu1 %100 }
  0xbf   :  { %v490_v23 = vmul.f32 %v451_v33, %v451_v33  ;;  %v467_v1 = vmul.f32 %v382_v59, %v382_v59 }
  0xc1   :  { %v522_v48 = vadd.f32 %v490_v23, %v451_v33 }
  0xc4   :  { %v453_v0 = vpop.f32.mrf.mxu3 }
  0xc5   :  { %v390_v2 = vpop.f32.mrf.mxu0  ;;  %v454_v26 = vadd.f32 %v453_v0, %v947_v9 }
  0xc6   :  { %v391_v30 = vadd.f32 %v390_v2, %v131_v52 }
  0xc7   :  { %v491_v9 = vmul.f32 %v454_v26, %v454_v26 }
  0xc8   :  { %v470_v49 = vmul.f32 %v391_v30, %v391_v30 }
  0xc9   :  { %v523_v19 = vadd.f32 %v491_v9, %v454_v26 }
  0xcc   :  { %v456_v4 = vpop.f32.mrf.mxu3 }
  0xcd   :  { %v393_v10 = vpop.f32.mrf.mxu0  ;;  %v457_v16 = vadd.f32 %v456_v4, %v945_v8  ;;  %v388_v8 = vadd.f32 %v387_v60, %v126_v56  ;;  %v442_v56 = vadd.f32 %v967_v32, %v973_v47  ;;  %v489_v60 = vmul.f32 %v448_v43, %v448_v43  ;;  %v106_v4 = vpop.permute.xlu2 %105 }
  0xce   :  { %v394_v17 = vadd.f32 %v393_v10, %v136_v55  ;;  %v376_v10 = vadd.f32 %v965_v28, %v106_v4  ;;  %v436_v47 = vadd.f32 %v955_v20, %v975_v50  ;;  %v91_v28 = vpop.permute.xlu1 %90  ;;  %v499_v50 = vadd.f32 %v467_v1, %v382_v59 }
  0xcf   :  { %v492_v37 = vmul.f32 %v457_v16, %v457_v16  ;;  %v469_v0 = vmul.f32 %v388_v8, %v388_v8  ;;  %v487_v15 = vmul.f32 %v442_v56, %v442_v56 }
  0xd0   :  { %v471_v41 = vmul.f32 %v394_v17, %v394_v17 }
  0xd1   :  { %v524_v55 = vadd.f32 %v492_v37, %v457_v16  ;;  %v501_v32 = vadd.f32 %v469_v0, %v388_v8  ;;  %v96_v16 = vpop.permute.xlu0 %95  ;;  %v519_v33 = vadd.f32 %v487_v15, %v442_v56  ;;  %v367_v37 = vadd.f32 %v943_v7, %v91_v28  ;;  %v536_v56 = vld.sshfl [vmem:[#allocation1 + $0x8] sm:$0xff pattern:$0x73625140] }
  0xd2   :  { %v503_v2 = vadd.f32 %v471_v41, %v394_v17  ;;  %v429_v17 = vpop.f32.mrf.mxu2  ;;  %v370_v20 = vadd.f32 %v951_v14, %v96_v16 }
  0xd4   :  { %v459_v18 = vpop.f32.mrf.mxu3  ;;  %v463_v41 = vmul.f32 %v370_v20, %v370_v20 }
  0xd5   :  { %v460_v27 = vadd.f32 %v459_v18, %v941_v5  ;;  %v396_v29 = vpop.f32.mrf.mxu0  ;;  %v385_v5 = vadd.f32 %v384_v54, %v121_v3  ;;  %v379_v54 = vadd.f32 %v969_v36, %v111_v6  ;;  %v502_v3 = vadd.f32 %v470_v49, %v391_v30 }
  0xd6   :  { %v397_v31 = vadd.f32 %v396_v29, %v141_v34  ;;  %v445_v34 = vadd.f32 %v444_v46, %v961_v24  ;;  %v439_v24 = vadd.f32 %v963_v25, %v971_v39  ;;  %v521_v36 = vadd.f32 %v489_v60, %v448_v43 }
  0xd7   :  { %v493_v38 = vmul.f32 %v460_v27, %v460_v27  ;;  %v468_v53 = vmul.f32 %v385_v5, %v385_v5  ;;  %v466_v6 = vmul.f32 %v379_v54, %v379_v54  ;;  %v373_v25 = vadd.f32 %v957_v22, %v101_v44 }
  0xd8   :  { %v472_v42 = vmul.f32 %v397_v31, %v397_v31  ;;  %v488_v46 = vmul.f32 %v445_v34, %v445_v34  ;;  %v433_v18 = vadd.f32 %v949_v12, %v983_v61  ;;  %v486_v26 = vmul.f32 %v439_v24, %v439_v24 }
  0xd9   :  { %v525_v45 = vadd.f32 %v493_v38, %v460_v27  ;;  %v500_v39 = vadd.f32 %v468_v53, %v385_v5  ;;  %v465_v29 = vmul.f32 %v376_v10, %v376_v10  ;;  %v485_v30 = vmul.f32 %v436_v47, %v436_v47 }
  0xda   :  { %v504_v52 = vadd.f32 %v472_v42, %v397_v31  ;;  %v520_v27 = vadd.f32 %v488_v46, %v445_v34  ;;  %v430_v31 = vadd.f32 %v429_v17, %v981_v58  ;;  %v464_v22 = vmul.f32 %v373_v25, %v373_v25  ;;  %v535_v34 = vld.sshfl [vmem:[#allocation1] sm:$0xff pattern:$0x73625140] }
  0xdb   :  { %559 = vmatpush.msrb.mxu2 %v525_v45  ;;  %v498_v38 = vadd.f32 %v466_v6, %v379_v54  ;;  %v484_v12 = vmul.f32 %v433_v18, %v433_v18  ;;  %v427_v61 = vadd.f32 %v1004_v40, %v985_v62  ;;  %v518_v8 = vadd.f32 %v486_v26, %v439_v24  ;;  %v171_v40 = vpop.permute.xlu2 %170 }
  0xdc   :  { %544 = vmatpush.msrb.mxu1 %v504_v52  ;;  %v497_v14 = vadd.f32 %v465_v29, %v376_v10  ;;  %v424_v42 = vadd.f32 %v989_v11, %v997_v21  ;;  %v483_v58 = vmul.f32 %v430_v31, %v430_v31  ;;  %v517_v43 = vadd.f32 %v485_v30, %v436_v47 }
  0xdd   :  { %560 = vmatpush.msrb.mxu2 %v524_v55  ;;  %v462_v44 = vmul.f32 %v367_v37, %v367_v37  ;;  %v496_v7 = vadd.f32 %v464_v22, %v373_v25  ;;  %v482_v9 = vmul.f32 %v427_v61, %v427_v61  ;;  %v421_v45 = vadd.f32 %v987_v63, %v991_v13 }
  0xde   :  { %545 = vmatpush.msrb.mxu1 %v503_v2  ;;  %v516_v62 = vadd.f32 %v484_v12, %v433_v18  ;;  %v495_v5 = vadd.f32 %v463_v41, %v370_v20  ;;  %v481_v49 = vmul.f32 %v424_v42, %v424_v42  ;;  %v418_v52 = vadd.f32 %v979_v57, %v1002_v35 }
  0xdf   :  { %561 = vmatpush.msrb.mxu2 %v523_v19  ;;  %v515_v11 = vadd.f32 %v483_v58, %v430_v31  ;;  %v494_v21 = vadd.f32 %v462_v44, %v367_v37  ;;  %v480_v23 = vmul.f32 %v421_v45, %v421_v45  ;;  %v415_v55 = vadd.f32 %v977_v51, %v171_v40 }
  0xe0   :  { %546 = vmatpush.msrb.mxu1 %v502_v3  ;;  %v514_v59 = vadd.f32 %v482_v9, %v427_v61  ;;  %v479_v63 = vmul.f32 %v418_v52, %v418_v52  ;;  %v513_v13 = vadd.f32 %v481_v49, %v424_v42 }
  0xe1   :  { %562 = vmatpush.msrb.mxu2 %v522_v48  ;;  %v478_v0 = vmul.f32 %v415_v55, %v415_v55  ;;  %v512_v2 = vadd.f32 %v480_v23, %v421_v45 }
  0xe2   :  { %547 = vmatpush.msrb.mxu1 %v501_v32  ;;  %v511_v57 = vadd.f32 %v479_v63, %v418_v52 }
  0xe3   :  { %563 = vmatpush.msrb.mxu2 %v521_v36  ;;  %v510_v35 = vadd.f32 %v478_v0, %v415_v55  ;;  %v531_v19 = vpop.permute.xlu2 %530 }
  0xe4   :  { %548 = vmatpush.msrb.mxu1 %v500_v39 }
  0xe5   :  { %564 = vmatpush.msrb.mxu2 %v520_v27 }
  0xe6   :  { %549 = vmatpush.msrb.mxu1 %v499_v50 }
  0xe7   :  { %565 = vmatpush.msrb.mxu2 %v519_v33 }
  0xe8   :  { %550 = vmatpush.msrb.mxu1 %v498_v38 }
  0xe9   :  { %566 = vmatpush.msrb.mxu2 %v518_v8 }
  0xea   :  { %551 = vmatpush.msrb.mxu1 %v497_v14 }
  0xeb   :  { %567 = vmatpush.msrb.mxu2 %v517_v43 }
  0xec   :  { %552 = vmatpush.msrb.mxu1 %v496_v7 }
  0xed   :  { %568 = vmatpush.msrb.mxu2 %v516_v62 }
  0xee   :  { %553 = vmatpush.msrb.mxu1 %v495_v5 }
  0xef   :  { %569 = vmatpush.msrb.mxu2 %v515_v11 }
  0xf0   :  { %554 = vmatpush.msrb.mxu1 %v494_v21 }
  0xf1   :  { %570 = vmatpush.msrb.mxu2 %v514_v59  ;;  %555 = vmatmul.f32.vlgmr.msrb.gmra.mxu1 %v535_v34 }
  0xf3   :  { %571 = vmatpush.msrb.mxu2 %v513_v13 }
  0xf5   :  { %572 = vmatpush.msrb.mxu2 %v512_v2 }
  0xf7   :  { %573 = vmatpush.msrb.mxu2 %v511_v57 }
  0xf9   :  { %574 = vmatpush.msrb.mxu2 %v510_v35 }
  0xfa   :  { %575 = vmatmul.f32.vlgmr.msrb.gmra.mxu2 %v536_v56 }
 0x16e   :  { %v556_v60 = vpop.f32.mrf.mxu1 }
 0x16f   :  { %v557_v51 = vadd.f32 %v556_v60, %v531_v19 }
 0x17d   :  { %v576_v53 = vpop.f32.mrf.mxu2 }
 0x17e   :  { %v577_v54 = vadd.f32 %v576_v53, %v557_v51 }
 0x180   :  { %579 = vst [vmem:[#allocation2] sm:$0x3] %v577_v54 }
 0x181   :  { %590 = dma.vmem_to_hbm [thread:$0]  %s586_s4, 32, %s588_s26, [#allocation3]  }
 0x182   :  { %667 = dma.done.wait [#allocation3], 32  }
 0x183   :  { %668 = vsyncadd [#allocation3], 4294967264 }
 0x184   :  { %595 = vsyncpa [#allocation3], 1 }

</bundles_post_ra>
